<compile_context>
chip_gen: v7x
topology: tpu7x:2x2x1
jax: 0.10.0
libtpu: 0.0.40
codegen_flags: <defaults>
</compile_context>

<pallas_src>
import functools

import jax
import jax.numpy as jnp
from jax.experimental import pallas as pl
from jax.experimental.pallas import tpu as pltpu

STATE_DIM = 376        # Humanoid-v4 observation dim
ACTION_DIM = 17        # Humanoid-v4 action dim
IN_DIM = STATE_DIM + ACTION_DIM
HIDDEN_DIM = 256
HEAD_PAD = 128         # fc3 output (1) zero-padded to a lane-dense width
TILE_B = 128           # batch tile: safe on v5e, fine on v6e/v7x


def _critic_kernel(s_ref, a_ref, w1s_ref, w1a_ref, b1_ref,
                   w2_ref, b2_ref, w3_ref, b3_ref, q_ref):
    # fc1 on concat([state, action]) == state @ W1[:376] + action @ W1[376:]
    h1 = jnp.dot(s_ref[...], w1s_ref[...], preferred_element_type=jnp.float32)
    h1 = h1 + jnp.dot(a_ref[...], w1a_ref[...], preferred_element_type=jnp.float32)
    h1 = jnp.maximum(h1 + b1_ref[...], 0.0).astype(jnp.bfloat16)

    # fc2 + relu
    h2 = jnp.dot(h1, w2_ref[...], preferred_element_type=jnp.float32) + b2_ref[...]
    h2 = jnp.maximum(h2, 0.0).astype(jnp.bfloat16)

    # fc3 (zero-padded to 128 lanes -> one unmasked wide store)
    q_ref[...] = jnp.dot(h2, w3_ref[...], preferred_element_type=jnp.float32) + b3_ref[...]


@jax.jit
def critic_forward(state, action, params):
    """state: [B, 376] f32, action: [B, 17] f32 -> q: [B, 1] f32."""
    w1, b1, w2, b2, w3, b3 = params
    b = state.shape[0]

    # Split fc1 so the concat is done "virtually" inside the kernel; cast
    # matmul operands to bf16 (biases / epilogue stay f32).
    w1s = w1[:STATE_DIM].astype(jnp.bfloat16)
    w1a = w1[STATE_DIM:].astype(jnp.bfloat16)
    w2b = w2.astype(jnp.bfloat16)
    # Zero-pad the 1-wide head to a lane-dense 128 columns.
    w3p = jnp.zeros((HIDDEN_DIM, HEAD_PAD), jnp.bfloat16).at[:, :1].set(
        w3.astype(jnp.bfloat16))
    b3p = jnp.zeros((1, HEAD_PAD), jnp.float32).at[:, :1].set(b3)

    # Pad the batch to a multiple of the tile.
    b_pad = pl.cdiv(b, TILE_B) * TILE_B
    s = jnp.pad(state.astype(jnp.bfloat16), ((0, b_pad - b), (0, 0)))
    a = jnp.pad(action.astype(jnp.bfloat16), ((0, b_pad - b), (0, 0)))

    flops = 2 * b_pad * (IN_DIM * HIDDEN_DIM
                         + HIDDEN_DIM * HIDDEN_DIM
                         + HIDDEN_DIM * HEAD_PAD)
    bytes_accessed = (
        2 * (IN_DIM * HIDDEN_DIM + HIDDEN_DIM * HIDDEN_DIM + HIDDEN_DIM * HEAD_PAD)  # bf16 weights
        + 4 * (2 * HIDDEN_DIM + HEAD_PAD)                                            # f32 biases
        + 2 * b_pad * (STATE_DIM + ACTION_DIM)                                       # bf16 inputs
        + 4 * b_pad * HEAD_PAD)                                                      # f32 output

    q_pad = pl.pallas_call(
        _critic_kernel,
        out_shape=jax.ShapeDtypeStruct((b_pad, HEAD_PAD), jnp.float32),
        grid_spec=pltpu.PrefetchScalarGridSpec(
            num_scalar_prefetch=0,
            grid=(b_pad // TILE_B,),
            in_specs=[
                pl.BlockSpec((TILE_B, STATE_DIM), lambda i: (i, 0)),       # state tile
                pl.BlockSpec((TILE_B, ACTION_DIM), lambda i: (i, 0)),      # action tile
                pl.BlockSpec((STATE_DIM, HIDDEN_DIM), lambda i: (0, 0)),   # W1[:376]
                pl.BlockSpec((ACTION_DIM, HIDDEN_DIM), lambda i: (0, 0)),  # W1[376:]
                pl.BlockSpec((1, HIDDEN_DIM), lambda i: (0, 0)),           # b1
                pl.BlockSpec((HIDDEN_DIM, HIDDEN_DIM), lambda i: (0, 0)),  # W2
                pl.BlockSpec((1, HIDDEN_DIM), lambda i: (0, 0)),           # b2
                pl.BlockSpec((HIDDEN_DIM, HEAD_PAD), lambda i: (0, 0)),    # W3 (padded)
                pl.BlockSpec((1, HEAD_PAD), lambda i: (0, 0)),             # b3 (padded)
            ],
            out_specs=pl.BlockSpec((TILE_B, HEAD_PAD), lambda i: (i, 0)),
        ),
        compiler_params=pltpu.CompilerParams(
            dimension_semantics=("parallel",)),
        cost_estimate=pl.CostEstimate(
            flops=flops, transcendentals=0, bytes_accessed=bytes_accessed),
    )(s, a, w1s, w1a, b1, w2b, b2, w3p, b3p)

    return q_pad[:b, :1]


def init_params(key):
    """Deterministic init mimicking nn.Linear (uniform +-1/sqrt(fan_in)).

    Weights stored as [in_features, out_features] (transpose of PyTorch's
    nn.Linear weight) so the kernel computes x @ W + b directly.
    """
    def linear(k, fan_in, fan_out):
        kw, kb = jax.random.split(k)
        bound = 1.0 / jnp.sqrt(fan_in)
        w = jax.random.uniform(kw, (fan_in, fan_out), jnp.float32, -bound, bound)
        bb = jax.random.uniform(kb, (1, fan_out), jnp.float32, -bound, bound)
        return w, bb

    k1, k2, k3 = jax.random.split(key, 3)
    w1, b1 = linear(k1, IN_DIM, HIDDEN_DIM)
    w2, b2 = linear(k2, HIDDEN_DIM, HIDDEN_DIM)
    w3, b3 = linear(k3, HIDDEN_DIM, 1)
    return (w1, b1, w2, b2, w3, b3)


def critic_forward_ref(state, action, params):
    """Plain-JAX f32 reference for correctness checking."""
    w1, b1, w2, b2, w3, b3 = params
    x = jnp.concatenate([state, action], axis=1)
    h1 = jnp.maximum(x @ w1 + b1, 0.0)
    h2 = jnp.maximum(h1 @ w2 + b2, 0.0)
    return h2 @ w3 + b3


if __name__ == "__main__":
    key = jax.random.PRNGKey(0)
    pkey, skey, akey = jax.random.split(key, 3)

    params = init_params(pkey)

    for batch in (2, 200):  # small case + one that exercises padding / 2 grid steps
        s = jax.random.normal(jax.random.fold_in(skey, batch),
                              (batch, STATE_DIM), jnp.float32)
        a = jax.random.normal(jax.random.fold_in(akey, batch),
                              (batch, ACTION_DIM), jnp.float32)

        q = critic_forward(s, a, params)
        jax.block_until_ready(q)

        q_ref = critic_forward_ref(s, a, params)
        assert q.shape == (batch, 1), q.shape
        # bf16 matmuls -> slightly looser tolerance vs f32 reference.
        assert jnp.allclose(q, q_ref, atol=5e-2, rtol=5e-2), (
            float(jnp.max(jnp.abs(q - q_ref))))

    print("KERNEL_OK")
</pallas_src>

<mosaic_0001>
module attributes {stable_mosaic.version = 11 : i64} {
  func.func @_critic_kernel(%arg0: i32, %arg1: memref<128x376xbf16, #tpu.memory_space<vmem>>, %arg2: memref<128x17xbf16, #tpu.memory_space<vmem>>, %arg3: memref<376x256xbf16, #tpu.memory_space<vmem>>, %arg4: memref<17x256xbf16, #tpu.memory_space<vmem>>, %arg5: memref<1x256xf32, #tpu.memory_space<vmem>>, %arg6: memref<256x256xbf16, #tpu.memory_space<vmem>>, %arg7: memref<1x256xf32, #tpu.memory_space<vmem>>, %arg8: memref<256x128xbf16, #tpu.memory_space<vmem>>, %arg9: memref<1x128xf32, #tpu.memory_space<vmem>>, %arg10: memref<128x128xf32, #tpu.memory_space<vmem>>) attributes {dimension_semantics = [#tpu.dimension_semantics<parallel>], iteration_bounds = array<i64: 1>, scalar_prefetch = 0 : i64, scratch_operands = 0 : i64, tpu.core_type = #tpu.core_type<tc>, window_params = [{transform_indices = @transform_0, window_bounds = array<i64: 128, 376>}, {transform_indices = @transform_1, window_bounds = array<i64: 128, 17>}, {pipeline_mode = #tpu.pipeline_mode<synchronous>, transform_indices = @transform_2, window_bounds = array<i64: 376, 256>}, {pipeline_mode = #tpu.pipeline_mode<synchronous>, transform_indices = @transform_3, window_bounds = array<i64: 17, 256>}, {pipeline_mode = #tpu.pipeline_mode<synchronous>, transform_indices = @transform_4, window_bounds = array<i64: 1, 256>}, {pipeline_mode = #tpu.pipeline_mode<synchronous>, transform_indices = @transform_5, window_bounds = array<i64: 256, 256>}, {pipeline_mode = #tpu.pipeline_mode<synchronous>, transform_indices = @transform_6, window_bounds = array<i64: 1, 256>}, {pipeline_mode = #tpu.pipeline_mode<synchronous>, transform_indices = @transform_7, window_bounds = array<i64: 256, 128>}, {pipeline_mode = #tpu.pipeline_mode<synchronous>, transform_indices = @transform_8, window_bounds = array<i64: 1, 128>}, {transform_indices = @transform_9, window_bounds = array<i64: 128, 128>}]} {
    %c0 = arith.constant 0 : index
    %c0_0 = arith.constant 0 : index
    %0 = vector.load %arg1[%c0, %c0_0] : memref<128x376xbf16, #tpu.memory_space<vmem>>, vector<128x376xbf16>
    %c0_1 = arith.constant 0 : index
    %c0_2 = arith.constant 0 : index
    %1 = vector.load %arg3[%c0_1, %c0_2] : memref<376x256xbf16, #tpu.memory_space<vmem>>, vector<376x256xbf16>
    %cst = arith.constant dense<0.000000e+00> : vector<128x256xf32>
    %2 = tpu.matmul %0, %1, %cst {dimension_numbers = #tpu.dot_dimension_numbers<[1], [0], [0], [1], [0, 0, 1, 1], [], []>} : vector<128x376xbf16>, vector<376x256xbf16>, vector<128x256xf32> -> vector<128x256xf32>
    %c0_3 = arith.constant 0 : index
    %c0_4 = arith.constant 0 : index
    %3 = vector.load %arg2[%c0_3, %c0_4] : memref<128x17xbf16, #tpu.memory_space<vmem>>, vector<128x17xbf16>
    %c0_5 = arith.constant 0 : index
    %c0_6 = arith.constant 0 : index
    %4 = vector.load %arg4[%c0_5, %c0_6] : memref<17x256xbf16, #tpu.memory_space<vmem>>, vector<17x256xbf16>
    %cst_7 = arith.constant dense<0.000000e+00> : vector<128x256xf32>
    %5 = tpu.matmul %3, %4, %cst_7 {dimension_numbers = #tpu.dot_dimension_numbers<[1], [0], [0], [1], [0, 0, 1, 1], [], []>} : vector<128x17xbf16>, vector<17x256xbf16>, vector<128x256xf32> -> vector<128x256xf32>
    %6 = arith.addf %2, %5 : vector<128x256xf32>
    %c0_8 = arith.constant 0 : index
    %c0_9 = arith.constant 0 : index
    %7 = vector.load %arg5[%c0_8, %c0_9] : memref<1x256xf32, #tpu.memory_space<vmem>>, vector<1x256xf32>
    %8 = vector.broadcast %7 : vector<1x256xf32> to vector<128x256xf32>
    %9 = arith.addf %6, %8 : vector<128x256xf32>
    %cst_10 = arith.constant 0.000000e+00 : f32
    %10 = vector.broadcast %cst_10 : f32 to vector<128x256xf32>
    %11 = arith.maximumf %9, %10 : vector<128x256xf32>
    %12 = arith.truncf %11 : vector<128x256xf32> to vector<128x256xbf16>
    %c0_11 = arith.constant 0 : index
    %c0_12 = arith.constant 0 : index
    %13 = vector.load %arg6[%c0_11, %c0_12] : memref<256x256xbf16, #tpu.memory_space<vmem>>, vector<256x256xbf16>
    %cst_13 = arith.constant dense<0.000000e+00> : vector<128x256xf32>
    %14 = tpu.matmul %12, %13, %cst_13 {dimension_numbers = #tpu.dot_dimension_numbers<[1], [0], [0], [1], [0, 0, 1, 1], [], []>} : vector<128x256xbf16>, vector<256x256xbf16>, vector<128x256xf32> -> vector<128x256xf32>
    %c0_14 = arith.constant 0 : index
    %c0_15 = arith.constant 0 : index
    %15 = vector.load %arg7[%c0_14, %c0_15] : memref<1x256xf32, #tpu.memory_space<vmem>>, vector<1x256xf32>
    %16 = vector.broadcast %15 : vector<1x256xf32> to vector<128x256xf32>
    %17 = arith.addf %14, %16 : vector<128x256xf32>
    %cst_16 = arith.constant 0.000000e+00 : f32
    %18 = vector.broadcast %cst_16 : f32 to vector<128x256xf32>
    %19 = arith.maximumf %17, %18 : vector<128x256xf32>
    %20 = arith.truncf %19 : vector<128x256xf32> to vector<128x256xbf16>
    %c0_17 = arith.constant 0 : index
    %c0_18 = arith.constant 0 : index
    %21 = vector.load %arg8[%c0_17, %c0_18] : memref<256x128xbf16, #tpu.memory_space<vmem>>, vector<256x128xbf16>
    %cst_19 = arith.constant dense<0.000000e+00> : vector<128x128xf32>
    %22 = tpu.matmul %20, %21, %cst_19 {dimension_numbers = #tpu.dot_dimension_numbers<[1], [0], [0], [1], [0, 0, 1, 1], [], []>} : vector<128x256xbf16>, vector<256x128xbf16>, vector<128x128xf32> -> vector<128x128xf32>
    %c0_20 = arith.constant 0 : index
    %c0_21 = arith.constant 0 : index
    %23 = vector.load %arg9[%c0_20, %c0_21] : memref<1x128xf32, #tpu.memory_space<vmem>>, vector<1x128xf32>
    %24 = vector.broadcast %23 : vector<1x128xf32> to vector<128x128xf32>
    %25 = arith.addf %22, %24 : vector<128x128xf32>
    %c0_22 = arith.constant 0 : index
    %c0_23 = arith.constant 0 : index
    %26 = vector.load %arg10[%c0_22, %c0_23] : memref<128x128xf32, #tpu.memory_space<vmem>>, vector<128x128xf32>
    tpu.vector_store %arg10[%c0_22, %c0_23], %25 {strides = array<i32>} : memref<128x128xf32, #tpu.memory_space<vmem>>, vector<128x128xf32>,
    return
  }
  func.func @transform_0(%arg0: i32) -> (i32, i32) {
    %c0_i32 = arith.constant 0 : i32
    %c0_i32_0 = arith.constant 0 : i32
    return %arg0, %c0_i32 : i32, i32
  }
  func.func @transform_1(%arg0: i32) -> (i32, i32) {
    %c0_i32 = arith.constant 0 : i32
    %c0_i32_0 = arith.constant 0 : i32
    return %arg0, %c0_i32 : i32, i32
  }
  func.func @transform_2(%arg0: i32) -> (i32, i32) {
    %c0_i32 = arith.constant 0 : i32
    %c0_i32_0 = arith.constant 0 : i32
    %c0_i32_1 = arith.constant 0 : i32
    return %c0_i32, %c0_i32_0 : i32, i32
  }
  func.func @transform_3(%arg0: i32) -> (i32, i32) {
    %c0_i32 = arith.constant 0 : i32
    %c0_i32_0 = arith.constant 0 : i32
    %c0_i32_1 = arith.constant 0 : i32
    return %c0_i32, %c0_i32_0 : i32, i32
  }
  func.func @transform_4(%arg0: i32) -> (i32, i32) {
    %c0_i32 = arith.constant 0 : i32
    %c0_i32_0 = arith.constant 0 : i32
    %c0_i32_1 = arith.constant 0 : i32
    return %c0_i32, %c0_i32_0 : i32, i32
  }
  func.func @transform_5(%arg0: i32) -> (i32, i32) {
    %c0_i32 = arith.constant 0 : i32
    %c0_i32_0 = arith.constant 0 : i32
    %c0_i32_1 = arith.constant 0 : i32
    return %c0_i32, %c0_i32_0 : i32, i32
  }
  func.func @transform_6(%arg0: i32) -> (i32, i32) {
    %c0_i32 = arith.constant 0 : i32
    %c0_i32_0 = arith.constant 0 : i32
    %c0_i32_1 = arith.constant 0 : i32
    return %c0_i32, %c0_i32_0 : i32, i32
  }
  func.func @transform_7(%arg0: i32) -> (i32, i32) {
    %c0_i32 = arith.constant 0 : i32
    %c0_i32_0 = arith.constant 0 : i32
    %c0_i32_1 = arith.constant 0 : i32
    return %c0_i32, %c0_i32_0 : i32, i32
  }
  func.func @transform_8(%arg0: i32) -> (i32, i32) {
    %c0_i32 = arith.constant 0 : i32
    %c0_i32_0 = arith.constant 0 : i32
    %c0_i32_1 = arith.constant 0 : i32
    return %c0_i32, %c0_i32_0 : i32, i32
  }
  func.func @transform_9(%arg0: i32) -> (i32, i32) {
    %c0_i32 = arith.constant 0 : i32
    %c0_i32_0 = arith.constant 0 : i32
    return %arg0, %c0_i32 : i32, i32
  }
}

</mosaic_0001>

<bundles_post_ra>
// kernel: critic_forward.1
= control target key start
LH: loop header
LB: loop body
LE: loop exit
PB: predicated region body
PF: predicated region fallthrough
CT: control target
= control target key end

     0   :  { %vm211_vm0 = vcmask 1040384   ;;  %v2114_v1 = vmov 0   ;;  %vm186_vm1 = vcmask 138240   ;;  %vm713_vm2 = vcmask 1043456   ;;  %s2747_s3 = inlined_call_operand.vmem [shape: bf16[17,256], index: 3, kind: input, shape index: {}]   ;;  %s2748_s1 = inlined_call_operand.vmem [shape: bf16[128,17], index: 1, kind: input, shape index: {}]   ;;  %s2749_s2 = inlined_call_operand.vmem [shape: bf16[376,256], index: 2, kind: input, shape index: {}]   ;;  %s2750_s0 = inlined_call_operand.vmem [shape: bf16[128,376], index: 0, kind: input, shape index: {}]   ;;  %s2751_s5 = inlined_call_operand.vmem [shape: bf16[256,256], index: 5, kind: input, shape index: {}]   ;;  %s2752_s7 = inlined_call_operand.vmem [shape: bf16[256,128], index: 7, kind: input, shape index: {}]   ;;  %s2753_s4 = inlined_call_operand.vmem [shape: f32[1,256], index: 4, kind: input, shape index: {}]   ;;  %s2754_s6 = inlined_call_operand.vmem [shape: f32[1,256], index: 6, kind: input, shape index: {}]   ;;  %s2755_s8 = inlined_call_operand.vmem [shape: f32[1,128], index: 8, kind: input, shape index: {}]   ;;  %s2756_s9 = inlined_call_operand.vmem [shape: f32[128,128], index: 9, kind: output, shape index: {}]  }
   0x1   :  { %v130_v0 = vld [vmem:[%s2747_s3 + $0x10] sm:$0x11]  ;;  %v213_v2 = vsel %vm211_vm0, 65535, %v2114_v1  ;;  %252 = vmatprep.mubr.bf16.mxu0 %v2114_v1  ;;  %v1934_v3 = vld [vmem:[%s2747_s3 + $0x4] ss:$8 sps:$4 sm:$0xff]   ;;  %v1960_v25 = vld [vmem:[%s2748_s1 + $0x18] sm:$0xff]  }
   0x2   :  { %v1936_v4 = vld [vmem:[%s2747_s3] ss:$8 sps:$4 sm:$0xff]   ;;  %v1666_v5 = vcombine.high %v130_v0, %v130_v0  ;;  %v1665_v6 = vcombine.low %v130_v0, %v130_v0  ;;  %220 = vmatprep.subr.bf16.mxu0 %v1934_v3  ;;  %v1942_v9 = vld [vmem:[%s2749_s2 + $0x4] ss:$8 sps:$4 sm:$0xff]   ;;  %v1945_v12 = vld [vmem:[%s2749_s2 + $0x14] ss:$8 sps:$4 sm:$0xff]  }
   0x3   :  { %221 = vmatpush1.bf16.msra.mxu0 %v1936_v4  ;;  %v1939_v10 = vld [vmem:[%s2748_s1] sm:$0xff]   ;;  %v1943_v13 = vld [vmem:[%s2749_s2 + $0x10] ss:$8 sps:$4 sm:$0xff]   ;;  %v1946_v15 = vld [vmem:[%s2748_s1 + $0x8] sm:$0xff]   ;;  %vm688_vm3 = vcmask 982016  }
   0x4   :  { %v218_v7 = vand.u32 %v1666_v5, %v213_v2  ;;  %v215_v8 = vand.u32 %v1665_v6, %v213_v2  ;;  %v1940_v11 = vld [vmem:[%s2749_s2] ss:$8 sps:$4 sm:$0xff]   ;;  %v1949_v14 = vld [vmem:[%s2749_s2 + $0x24] ss:$8 sps:$4 sm:$0xff]   ;;  %v1952_v17 = vld [vmem:[%s2749_s2 + $0x34] ss:$8 sps:$4 sm:$0xff]  }
   0x5   :  { %v1947_v16 = vld [vmem:[%s2749_s2 + $0x20] ss:$8 sps:$4 sm:$0xff]   ;;  %v1950_v18 = vld [vmem:[%s2749_s2 + $0x30] ss:$8 sps:$4 sm:$0xff]   ;;  %v1956_v19 = vld [vmem:[%s2749_s2 + $0x44] ss:$8 sps:$4 sm:$0xff]  }
   0x6   :  { %222 = vmatprep.subr.bf16.mxu0 %v218_v7  ;;  %v1953_v20 = vld [vmem:[%s2748_s1 + $0x10] sm:$0xff]   ;;  %v1954_v21 = vld [vmem:[%s2749_s2 + $0x40] ss:$8 sps:$4 sm:$0xff]   ;;  %v1963_v24 = vld [vmem:[%s2749_s2 + $0x64] ss:$8 sps:$4 sm:$0xff]  }
   0x7   :  { %223 = vmatpush1.bf16.msra.mxu0 %v215_v8  ;;  %v1959_v22 = vld [vmem:[%s2749_s2 + $0x54] ss:$8 sps:$4 sm:$0xff]   ;;  %v1957_v23 = vld [vmem:[%s2749_s2 + $0x50] ss:$8 sps:$4 sm:$0xff]   ;;  %v1961_v26 = vld [vmem:[%s2749_s2 + $0x60] ss:$8 sps:$4 sm:$0xff]  }
   0x8   :  { %720 = vmatprep.subr.bf16.mxu0 %v1942_v9  ;;  %v1966_v27 = vld [vmem:[%s2749_s2 + $0x74] ss:$8 sps:$4 sm:$0xff]   ;;  %v1964_v28 = vld [vmem:[%s2749_s2 + $0x70] ss:$8 sps:$4 sm:$0xff]   ;;  %v1970_v29 = vld [vmem:[%s2749_s2 + $0x84] ss:$8 sps:$4 sm:$0xff]  }
   0x9   :  { %v1967_v30 = vld [vmem:[%s2748_s1 + $0x20] sm:$0xff]   ;;  %v1973_v32 = vld [vmem:[%s2749_s2 + $0x94] ss:$8 sps:$4 sm:$0xff]   ;;  %v1971_v33 = vld [vmem:[%s2749_s2 + $0x90] ss:$8 sps:$4 sm:$0xff]  }
   0xa   :  { %1667 = vmatmul.mubr.msk.bf16.vlgmr.msra.gmra.mrb[0].mxu0 %vm186_vm1, %v1939_v10  ;;  %v1968_v31 = vld [vmem:[%s2749_s2 + $0x80] ss:$8 sps:$4 sm:$0xff]   ;;  %v1977_v34 = vld [vmem:[%s2749_s2 + $0xa4] ss:$8 sps:$4 sm:$0xff]   ;;  %v1980_v37 = vld [vmem:[%s2749_s2 + $0xb4] ss:$8 sps:$4 sm:$0xff]  }
   0xb   :  { %721 = vmatpush1.bf16.msra.mxu0 %v1940_v11  ;;  %262 = vmatprep.mubr.bf16.mxu0 %v2114_v1  ;;  %v1974_v35 = vld [vmem:[%s2748_s1 + $0x28] sm:$0xff]   ;;  %v1978_v38 = vld [vmem:[%s2749_s2 + $0xb0] ss:$8 sps:$4 sm:$0xff]   ;;  %v1987_v42 = vld [vmem:[%s2749_s2 + $0xd4] ss:$8 sps:$4 sm:$0xff]  }
   0xc   :  { %722 = vmatprep.subr.bf16.mxu0 %v1945_v12  ;;  %v1975_v36 = vld [vmem:[%s2749_s2 + $0xa0] ss:$8 sps:$4 sm:$0xff]   ;;  %v1984_v39 = vld [vmem:[%s2749_s2 + $0xc4] ss:$8 sps:$4 sm:$0xff]   ;;  %v1981_v40 = vld [vmem:[%s2748_s1 + $0x30] sm:$0xff]  }
   0xd   :  { %v1982_v41 = vld [vmem:[%s2749_s2 + $0xc0] ss:$8 sps:$4 sm:$0xff]   ;;  %v1985_v43 = vld [vmem:[%s2749_s2 + $0xd0] ss:$8 sps:$4 sm:$0xff]   ;;  %v1991_v44 = vld [vmem:[%s2749_s2 + $0xe4] ss:$8 sps:$4 sm:$0xff]  }
   0xe   :  { %v1988_v45 = vld [vmem:[%s2748_s1 + $0x38] sm:$0xff]   ;;  %v1989_v46 = vld [vmem:[%s2749_s2 + $0xe0] ss:$8 sps:$4 sm:$0xff]   ;;  %v1997_v47 = vld [vmem:[%s2750_s0 + $0x4] ss:$12 sps:$4 sm:$0xff]  }
   0xf   :  { %723 = vmatpush1.bf16.msra.mxu0 %v1943_v13  ;;  %v1994_v48 = vld [vmem:[%s2749_s2 + $0xf4] ss:$8 sps:$4 sm:$0xff]   ;;  %v1992_v49 = vld [vmem:[%s2749_s2 + $0xf0] ss:$8 sps:$4 sm:$0xff]   ;;  %v2000_v50 = vld [vmem:[%s2749_s2 + $0x104] ss:$8 sps:$4 sm:$0xff]  }
  0x10   :  { %724 = vmatprep.subr.bf16.mxu0 %v1949_v14  ;;  %v2050_v51 = vld [vmem:[%s2751_s5 + $0x4] ss:$8 sps:$4 sm:$0xff]   ;;  %v2052_v53 = vld [vmem:[%s2751_s5] ss:$8 sps:$4 sm:$0xff]   ;;  %v2053_v55 = vld [vmem:[%s2751_s5 + $0x14] ss:$8 sps:$4 sm:$0xff]  }
  0x11   :  { %v1995_v52 = vld [vmem:[%s2750_s0] ss:$12 sps:$4 sm:$0xff]   ;;  %1242 = vmatprep.subr.bf16.mxu1 %v2050_v51  ;;  %v2001_v56 = vld [vmem:[%s2750_s0 + $0x1c] ss:$12 sps:$4 sm:$0xff]   ;;  %v2055_v57 = vld [vmem:[%s2751_s5 + $0x10] ss:$8 sps:$4 sm:$0xff]  }
  0x12   :  { %1668 = vmatmul.mubr.msk.bf16.gmra.mrb[4].mxu0 %vm186_vm1, %v1946_v15  ;;  %v1998_v54 = vld [vmem:[%s2749_s2 + $0x100] ss:$8 sps:$4 sm:$0xff]   ;;  %1243 = vmatpush1.bf16.msra.mxu1 %v2052_v53  ;;  %v2006_v58 = vld [vmem:[%s2749_s2 + $0x114] ss:$8 sps:$4 sm:$0xff]   ;;  %v2056_v59 = vld [vmem:[%s2751_s5 + $0x24] ss:$8 sps:$4 sm:$0xff]  }
  0x13   :  { %725 = vmatpush1.bf16.msra.mxu0 %v1947_v16  ;;  %272 = vmatprep.mubr.bf16.mxu0 %v2114_v1  ;;  %v2004_v60 = vld [vmem:[%s2749_s2 + $0x110] ss:$8 sps:$4 sm:$0xff]   ;;  %v2058_v61 = vld [vmem:[%s2751_s5 + $0x20] ss:$8 sps:$4 sm:$0xff]   ;;  %v2059_v62 = vld [vmem:[%s2751_s5 + $0x34] ss:$8 sps:$4 sm:$0xff]  }
  0x14   :  { %726 = vmatprep.subr.bf16.mxu0 %v1952_v17  ;;  %1244 = vmatprep.subr.bf16.mxu1 %v2053_v55  ;;  %v2012_v63 = vld [vmem:[%s2749_s2 + $0x124] ss:$8 sps:$4 sm:$0xff]   ;;  %v2007_v2 = vld [vmem:[%s2750_s0 + $0x34] ss:$12 sps:$4 sm:$0xff]   ;;  %v2061_v4 = vld [vmem:[%s2751_s5 + $0x30] ss:$8 sps:$4 sm:$0xff]  }
  0x15   :  { %v2003_v0 = vld [vmem:[%s2750_s0 + $0x18] ss:$12 sps:$4 sm:$0xff]   ;;  %v2010_v3 = vld [vmem:[%s2749_s2 + $0x120] ss:$8 sps:$4 sm:$0xff]   ;;  %v2018_v5 = vld [vmem:[%s2749_s2 + $0x134] ss:$8 sps:$4 sm:$0xff]  }
  0x16   :  { %1245 = vmatpush1.bf16.msra.mxu1 %v2055_v57  ;;  %v2062_v6 = vld [vmem:[%s2751_s5 + $0x44] ss:$8 sps:$4 sm:$0xff]   ;;  %v2016_v7 = vld [vmem:[%s2749_s2 + $0x130] ss:$8 sps:$4 sm:$0xff]   ;;  %v2064_v8 = vld [vmem:[%s2751_s5 + $0x40] ss:$8 sps:$4 sm:$0xff]  }
  0x17   :  { %727 = vmatpush1.bf16.msra.mxu0 %v1950_v18  ;;  %1246 = vmatprep.subr.bf16.mxu1 %v2056_v59  ;;  %v2065_v9 = vld [vmem:[%s2751_s5 + $0x54] ss:$8 sps:$4 sm:$0xff]   ;;  %v2024_v10 = vld [vmem:[%s2749_s2 + $0x144] ss:$8 sps:$4 sm:$0xff]   ;;  %v2067_v12 = vld [vmem:[%s2751_s5 + $0x50] ss:$8 sps:$4 sm:$0xff]  }
  0x18   :  { %728 = vmatprep.subr.bf16.mxu0 %v1956_v19  ;;  %v2009_v11 = vld [vmem:[%s2750_s0 + $0x30] ss:$12 sps:$4 sm:$0xff]   ;;  %v2013_v13 = vld [vmem:[%s2750_s0 + $0x4c] ss:$12 sps:$4 sm:$0xff]   ;;  %v2022_v14 = vld [vmem:[%s2749_s2 + $0x140] ss:$8 sps:$4 sm:$0xff]  }
  0x19   :  { %v2030_v15 = vld [vmem:[%s2749_s2 + $0x154] ss:$8 sps:$4 sm:$0xff]   ;;  %v2068_v16 = vld [vmem:[%s2751_s5 + $0x64] ss:$8 sps:$4 sm:$0xff]   ;;  %v2070_v17 = vld [vmem:[%s2751_s5 + $0x60] ss:$8 sps:$4 sm:$0xff]  }
  0x1a   :  { %1669 = vmatmul.mubr.msk.bf16.gmra.mrb[8].mxu0 %vm186_vm1, %v1953_v20  ;;  %1247 = vmatpush1.bf16.msra.mxu1 %v2058_v61  ;;  %v2028_v18 = vld [vmem:[%s2749_s2 + $0x150] ss:$8 sps:$4 sm:$0xff]   ;;  %v2071_v19 = vld [vmem:[%s2751_s5 + $0x74] ss:$8 sps:$4 sm:$0xff]   ;;  %v2036_v20 = vld [vmem:[%s2749_s2 + $0x164] ss:$8 sps:$4 sm:$0xff]  }
  0x1b   :  { %729 = vmatpush1.bf16.msra.mxu0 %v1954_v21  ;;  %282 = vmatprep.mubr.bf16.mxu0 %v2114_v1  ;;  %v111_v21 = vld [vmem:[%s2749_s2 + $0x170] sm:$0xff]  ;;  %v2048_v53 = vld [vmem:[%s2750_s0 + $0x98] ss:$12 sps:$4 sm:$0xff]   ;;  %v2094_v57 = vld [vmem:[%s2751_s5 + $0xe0] ss:$8 sps:$4 sm:$0xff]  }
  0x1c   :  { %730 = vmatprep.subr.bf16.mxu0 %v1959_v22  ;;  %1248 = vmatprep.subr.bf16.mxu1 %v2059_v62  ;;  %v2015_v22 = vld [vmem:[%s2750_s0 + $0x48] ss:$12 sps:$4 sm:$0xff]   ;;  %v2091_v55 = vld [vmem:[%s2751_s5 + $0xd0] ss:$8 sps:$4 sm:$0xff]   ;;  %v2098_v59 = vld [vmem:[%s2752_s7 + $0x40] sm:$0xff]  }
  0x1d   :  { %v2046_v51 = vld [vmem:[%s2750_s0 + $0x68] ss:$12 sps:$4 sm:$0xff]  }
  0x1e   :  { %1249 = vmatpush1.bf16.msra.mxu1 %v2061_v4 }
  0x1f   :  { %731 = vmatpush1.bf16.msra.mxu0 %v1957_v23  ;;  %1250 = vmatprep.subr.bf16.mxu1 %v2062_v6  ;;  %v2073_v23 = vld [vmem:[%s2751_s5 + $0x70] ss:$8 sps:$4 sm:$0xff]  }
  0x20   :  { %732 = vmatprep.subr.bf16.mxu0 %v1963_v24  ;;  %v2019_v24 = vld [vmem:[%s2750_s0 + $0x64] ss:$12 sps:$4 sm:$0xff]  }
  0x22   :  { %1670 = vmatmul.mubr.msk.bf16.gmra.mrb[12].mxu0 %vm186_vm1, %v1960_v25  ;;  %1251 = vmatpush1.bf16.msra.mxu1 %v2064_v8  ;;  %v2034_v25 = vld [vmem:[%s2749_s2 + $0x160] ss:$8 sps:$4 sm:$0xff]  }
  0x23   :  { %733 = vmatpush1.bf16.msra.mxu0 %v1961_v26  ;;  %292 = vmatprep.mubr.bf16.mxu0 %v2114_v1  ;;  %v1746_v26 = vcombine.high %v111_v21, %v111_v21 }
  0x24   :  { %734 = vmatprep.subr.bf16.mxu0 %v1966_v27  ;;  %1252 = vmatprep.subr.bf16.mxu1 %v2065_v9  ;;  %v1745_v27 = vcombine.low %v111_v21, %v111_v21 }
  0x26   :  { %1253 = vmatpush1.bf16.msra.mxu1 %v2067_v12 }
  0x27   :  { %735 = vmatpush1.bf16.msra.mxu0 %v1964_v28  ;;  %1254 = vmatprep.subr.bf16.mxu1 %v2068_v16  ;;  %v2074_v28 = vld [vmem:[%s2751_s5 + $0x84] ss:$8 sps:$4 sm:$0xff]  }
  0x28   :  { %736 = vmatprep.subr.bf16.mxu0 %v1970_v29  ;;  %v2076_v29 = vld [vmem:[%s2751_s5 + $0x80] ss:$8 sps:$4 sm:$0xff]  }
  0x2a   :  { %1671 = vmatmul.mubr.msk.bf16.gmra.mrb[16].mxu0 %vm186_vm1, %v1967_v30  ;;  %1255 = vmatpush1.bf16.msra.mxu1 %v2070_v17  ;;  %v2077_v30 = vld [vmem:[%s2751_s5 + $0x94] ss:$8 sps:$4 sm:$0xff]  }
  0x2b   :  { %737 = vmatpush1.bf16.msra.mxu0 %v1968_v31  ;;  %302 = vmatprep.mubr.bf16.mxu0 %v2114_v1  ;;  %v715_v31 = vsel %vm713_vm2, %v1745_v27, 0 }
  0x2c   :  { %738 = vmatprep.subr.bf16.mxu0 %v1973_v32  ;;  %1256 = vmatprep.subr.bf16.mxu1 %v2071_v19  ;;  %v2021_v32 = vld [vmem:[%s2750_s0 + $0x60] ss:$12 sps:$4 sm:$0xff]  }
  0x2d   :  { %v2099_v19 = vld [vmem:[%s2752_s7] sm:$0xff]  }
  0x2e   :  { %1257 = vmatpush1.bf16.msra.mxu1 %v2073_v23 }
  0x2f   :  { %739 = vmatpush1.bf16.msra.mxu0 %v1971_v33  ;;  %1258 = vmatprep.subr.bf16.mxu1 %v2074_v28  ;;  %v2079_v33 = vld [vmem:[%s2751_s5 + $0x90] ss:$8 sps:$4 sm:$0xff]   ;;  %v2101_v28 = vld [vmem:[%s2752_s7 + $0x8] sm:$0xff]  }
  0x30   :  { %740 = vmatprep.subr.bf16.mxu0 %v1977_v34  ;;  %v2025_v34 = vld [vmem:[%s2750_s0 + $0x7c] ss:$12 sps:$4 sm:$0xff]  }
  0x32   :  { %1672 = vmatmul.mubr.msk.bf16.gmra.mrb[20].mxu0 %vm186_vm1, %v1974_v35  ;;  %1259 = vmatpush1.bf16.msra.mxu1 %v2076_v29  ;;  %v2080_v35 = vld [vmem:[%s2751_s5 + $0xa4] ss:$8 sps:$4 sm:$0xff]  }
  0x33   :  { %741 = vmatpush1.bf16.msra.mxu0 %v1975_v36  ;;  %312 = vmatprep.mubr.bf16.mxu0 %v2114_v1  ;;  %v2082_v36 = vld [vmem:[%s2751_s5 + $0xa0] ss:$8 sps:$4 sm:$0xff]  }
  0x34   :  { %742 = vmatprep.subr.bf16.mxu0 %v1980_v37  ;;  %1260 = vmatprep.subr.bf16.mxu1 %v2077_v30  ;;  %v2083_v37 = vld [vmem:[%s2751_s5 + $0xb4] ss:$8 sps:$4 sm:$0xff]  }
  0x36   :  { %1261 = vmatpush1.bf16.msra.mxu1 %v2079_v33 }
  0x37   :  { %743 = vmatpush1.bf16.msra.mxu0 %v1978_v38  ;;  %1262 = vmatprep.subr.bf16.mxu1 %v2080_v35  ;;  %v2027_v38 = vld [vmem:[%s2750_s0 + $0x78] ss:$12 sps:$4 sm:$0xff]  }
  0x38   :  { %744 = vmatprep.subr.bf16.mxu0 %v1984_v39  ;;  %v2085_v39 = vld [vmem:[%s2751_s5 + $0xb0] ss:$8 sps:$4 sm:$0xff]  }
  0x3a   :  { %1673 = vmatmul.mubr.msk.bf16.gmra.mrb[24].mxu0 %vm186_vm1, %v1981_v40  ;;  %1263 = vmatpush1.bf16.msra.mxu1 %v2082_v36  ;;  %v2031_v40 = vld [vmem:[%s2750_s0 + $0x94] ss:$12 sps:$4 sm:$0xff]  }
  0x3b   :  { %745 = vmatpush1.bf16.msra.mxu0 %v1982_v41  ;;  %322 = vmatprep.mubr.bf16.mxu0 %v2114_v1  ;;  %v2086_v41 = vld [vmem:[%s2751_s5 + $0xc4] ss:$8 sps:$4 sm:$0xff]  }
  0x3c   :  { %746 = vmatprep.subr.bf16.mxu0 %v1987_v42  ;;  %1264 = vmatprep.subr.bf16.mxu1 %v2083_v37  ;;  %v2088_v42 = vld [vmem:[%s2751_s5 + $0xc0] ss:$8 sps:$4 sm:$0xff]   ;;  %v2103_v37 = vld [vmem:[%s2752_s7 + $0x10] sm:$0xff]  }
  0x3e   :  { %1265 = vmatpush1.bf16.msra.mxu1 %v2085_v39 }
  0x3f   :  { %747 = vmatpush1.bf16.msra.mxu0 %v1985_v43  ;;  %1266 = vmatprep.subr.bf16.mxu1 %v2086_v41  ;;  %v2089_v43 = vld [vmem:[%s2751_s5 + $0xd4] ss:$8 sps:$4 sm:$0xff]  }
  0x40   :  { %748 = vmatprep.subr.bf16.mxu0 %v1991_v44  ;;  %v2033_v44 = vld [vmem:[%s2750_s0 + $0x90] ss:$12 sps:$4 sm:$0xff]  }
  0x42   :  { %1674 = vmatmul.mubr.msk.bf16.gmra.mrb[28].mxu0 %vm186_vm1, %v1988_v45  ;;  %1267 = vmatpush1.bf16.msra.mxu1 %v2088_v42  ;;  %v2037_v45 = vld [vmem:[%s2750_s0 + $0xac] ss:$12 sps:$4 sm:$0xff]  }
  0x43   :  { %749 = vmatpush1.bf16.msra.mxu0 %v1989_v46  ;;  %752 = vmatprep.mubr.bf16.mxu0 %v1997_v47  ;;  %v2039_v46 = vld [vmem:[%s2750_s0 + $0xa8] ss:$12 sps:$4 sm:$0xff]  }
  0x44   :  { %750 = vmatprep.subr.bf16.mxu0 %v1994_v48  ;;  %1268 = vmatprep.subr.bf16.mxu1 %v2089_v43  ;;  %v2042_v47 = vld [vmem:[%s2750_s0 + $0x8] ss:$12 sps:$4 sm:$0xff]   ;;  %v2043_v48 = vld [vmem:[%s2750_s0 + $0x20] ss:$12 sps:$4 sm:$0xff]  }
  0x46   :  { %1269 = vmatpush1.bf16.msra.mxu1 %v2091_v55  ;;  %v2107_v55 = vld [vmem:[%s2752_s7 + $0x20] sm:$0xff]  }
  0x47   :  { %751 = vmatpush1.bf16.msra.mxu0 %v1992_v49  ;;  %v2044_v49 = vld [vmem:[%s2750_s0 + $0x38] ss:$12 sps:$4 sm:$0xff]  }
  0x48   :  { %833 = vmatprep.subr.bf16.mxu0 %v2000_v50  ;;  %v2045_v50 = vld [vmem:[%s2750_s0 + $0x50] ss:$12 sps:$4 sm:$0xff]  }
  0x4a   :  { %753 = vmatmul.mubr.bf16.vlgmr.msra.gmra.mrb[0].mxu0 %v1995_v52  ;;  %v2047_v52 = vld [vmem:[%s2750_s0 + $0x80] ss:$12 sps:$4 sm:$0xff]  }
  0x4b   :  { %834 = vmatpush1.bf16.msra.mxu0 %v1998_v54  ;;  %762 = vmatprep.mubr.bf16.mxu0 %v2001_v56  ;;  %v2049_v54 = vld [vmem:[%s2750_s0 + $0xb0] ss:$12 sps:$4 sm:$0xff]   ;;  %v2092_v56 = vld [vmem:[%s2751_s5 + $0xe4] ss:$8 sps:$4 sm:$0xff]  }
  0x4c   :  { %835 = vmatprep.subr.bf16.mxu0 %v2006_v58  ;;  %1270 = vmatprep.subr.bf16.mxu1 %v2092_v56  ;;  %v2097_v58 = vld [vmem:[%s2751_s5 + $0xf0] ss:$8 sps:$4 sm:$0xff]  }
  0x4d   :  { %1271 = vmatpush1.bf16.msra.mxu1 %v2094_v57 }
  0x4f   :  { %836 = vmatpush1.bf16.msra.mxu0 %v2004_v60  ;;  %v948_v60 = vlaneseq }
  0x50   :  { %837 = vmatprep.subr.bf16.mxu0 %v2012_v63  ;;  %v946_v63 = vld [vmem:[%s2753_s4] sm:$0x3] }
  0x51   :  { %v2543_v61 = vshrl.u32 %v948_v60, 7 }
  0x52   :  { %763 = vmatmul.mubr.bf16.gmra.mrb[4].mxu0 %v2003_v0 }
  0x53   :  { %772 = vmatprep.mubr.bf16.mxu0 %v2007_v2  ;;  %838 = vmatpush1.bf16.msra.mxu0 %v2010_v3  ;;  %v950_v62 = vsub.s32 0, %v2543_v61  ;;  %v954_v0 = vsub.s32 1, %v2543_v61 }
  0x54   :  { %839 = vmatprep.subr.bf16.mxu0 %v2018_v5 }
  0x55   :  { %v2552_v2 = vrot.slane %v946_v63, %v950_v62  ;;  %v2556_v3 = vrot.slane %v946_v63, %v954_v0 }
  0x57   :  { %840 = vmatpush1.bf16.msra.mxu0 %v2016_v7 }
  0x58   :  { %841 = vmatprep.subr.bf16.mxu0 %v2024_v10 }
  0x5a   :  { %773 = vmatmul.mubr.bf16.gmra.mrb[8].mxu0 %v2009_v11 }
  0x5b   :  { %782 = vmatprep.mubr.bf16.mxu0 %v2013_v13  ;;  %842 = vmatpush1.bf16.msra.mxu0 %v2022_v14 }
  0x5c   :  { %843 = vmatprep.subr.bf16.mxu0 %v2030_v15 }
  0x5f   :  { %844 = vmatpush1.bf16.msra.mxu0 %v2028_v18 }
  0x60   :  { %845 = vmatprep.subr.bf16.mxu0 %v2036_v20 }
  0x62   :  { %783 = vmatmul.mubr.bf16.gmra.mrb[12].mxu0 %v2015_v22  ;;  %v2100_v22 = vld [vmem:[%s2752_s7 + $0x48] sm:$0xff]  }
  0x63   :  { %792 = vmatprep.mubr.bf16.mxu0 %v2019_v24  ;;  %846 = vmatpush1.bf16.msra.mxu0 %v2034_v25 }
  0x64   :  { %1747 = vmatprep.subr.msk.bf16.mxu0 %vm713_vm2, %v1746_v26 }
  0x67   :  { %848 = vmatpush1.bf16.msra.mxu0 %v715_v31  ;;  %v2102_v31 = vld [vmem:[%s2752_s7 + $0x50] sm:$0xff]  }
  0x6a   :  { %793 = vmatmul.mubr.bf16.gmra.mrb[16].mxu0 %v2021_v32 }
  0x6b   :  { %802 = vmatprep.mubr.bf16.mxu0 %v2025_v34 }
  0x72   :  { %803 = vmatmul.mubr.bf16.gmra.mrb[20].mxu0 %v2027_v38 }
  0x73   :  { %812 = vmatprep.mubr.bf16.mxu0 %v2031_v40  ;;  %v2104_v40 = vld [vmem:[%s2752_s7 + $0x58] sm:$0xff]  }
  0x7a   :  { %813 = vmatmul.mubr.bf16.gmra.mrb[24].mxu0 %v2033_v44 }
  0x7b   :  { %822 = vmatprep.mubr.bf16.mxu0 %v2037_v45 }
  0x82   :  { %823 = vmatmul.mubr.bf16.gmra.mrb[28].mxu0 %v2039_v46  ;;  %v2105_v46 = vld [vmem:[%s2752_s7 + $0x18] sm:$0xff]  }
  0x83   :  { %865 = vmatprep.mubr.bf16.mxu0 %v2114_v1 }
  0x8a   :  { %1748 = vmatmul.mubr.msk.bf16.vlgmr.msra.gmra.mrb[0].mxu0 %vm688_vm3, %v2042_v47 }
  0x8b   :  { %875 = vmatprep.mubr.bf16.mxu0 %v2114_v1 }
  0x92   :  { %1749 = vmatmul.mubr.msk.bf16.gmra.mrb[4].mxu0 %vm688_vm3, %v2043_v48 }
  0x93   :  { %885 = vmatprep.mubr.bf16.mxu0 %v2114_v1 }
  0x9a   :  { %1750 = vmatmul.mubr.msk.bf16.gmra.mrb[8].mxu0 %vm688_vm3, %v2044_v49  ;;  %v2106_v49 = vld [vmem:[%s2752_s7 + $0x60] sm:$0xff]  }
  0x9b   :  { %895 = vmatprep.mubr.bf16.mxu0 %v2114_v1 }
  0xa2   :  { %1751 = vmatmul.mubr.msk.bf16.gmra.mrb[12].mxu0 %vm688_vm3, %v2045_v50 }
  0xa3   :  { %905 = vmatprep.mubr.bf16.mxu0 %v2114_v1 }
  0xaa   :  { %1752 = vmatmul.mubr.msk.bf16.gmra.mrb[16].mxu0 %vm688_vm3, %v2046_v51 }
  0xab   :  { %915 = vmatprep.mubr.bf16.mxu0 %v2114_v1 }
  0xb2   :  { %1753 = vmatmul.mubr.msk.bf16.gmra.mrb[20].mxu0 %vm688_vm3, %v2047_v52 }
  0xb3   :  { %925 = vmatprep.mubr.bf16.mxu0 %v2114_v1 }
  0xba   :  { %1754 = vmatmul.mubr.msk.bf16.gmra.mrb[24].mxu0 %vm688_vm3, %v2048_v53 }
  0xbb   :  { %935 = vmatprep.mubr.bf16.mxu0 %v2114_v1  ;;  %v2095_v1 = vld [vmem:[%s2751_s5 + $0xf4] ss:$8 sps:$4 sm:$0xff]  }
  0xbc   :  { %1272 = vmatprep.subr.bf16.mxu1 %v2095_v1  ;;  %v2108_v1 = vld [vmem:[%s2752_s7 + $0x68] sm:$0xff]  }
  0xbd   :  { %1273 = vmatpush1.bf16.msra.mxu1 %v2097_v58 }
  0xbe   :  { %1805 = vmatprep.subr.bf16.mxu1 %v2098_v59 }
  0xc2   :  { %1755 = vmatmul.mubr.msk.bf16.gmra.mrb[28].mxu0 %vm688_vm3, %v2049_v54 }
 0x15d   :  { %v867_v4 = vpop.f32.mrb[0].mxu0 }
 0x15e   :  { %v958_v5 = vadd.f32 %v2552_v2, %v867_v4  ;;  %v869_v6 = vpop.f32.mrb[1].mxu0 }
 0x15f   :  { %v959_v7 = vadd.f32 %v2556_v3, %v869_v6  ;;  %v871_v8 = vpop.f32.mrb[2].mxu0 }
 0x160   :  { %v960_v9 = vadd.f32 %v2552_v2, %v871_v8  ;;  %v873_v10 = vpop.f32.mrb[3].mxu0  ;;  %v990_v12 = vmax.f32 %v958_v5, 0.0  ;;  %v2109_v5 = vld [vmem:[%s2752_s7 + $0x28] sm:$0xff]   ;;  %v2110_v8 = vld [vmem:[%s2752_s7 + $0x70] sm:$0xff]  }
 0x161   :  { %v961_v11 = vadd.f32 %v2556_v3, %v873_v10  ;;  %v991_v14 = vmax.f32 %v959_v7, 0.0 }
 0x162   :  { %v992_v13 = vmax.f32 %v960_v9, 0.0 }
 0x163   :  { %v993_v15 = vmax.f32 %v961_v11, 0.0 }
 0x164   :  { %v1022_v16 = vpack.c.bf16 %v992_v13, %v990_v12 }
 0x165   :  { %v877_v17 = vpop.f32.mrb[4].mxu0  ;;  %v1023_v18 = vpack.c.bf16 %v993_v15, %v991_v14  ;;  %v2111_v14 = vld [vmem:[%s2752_s7 + $0x30] sm:$0xff]  }
 0x166   :  { %v962_v20 = vadd.f32 %v2552_v2, %v877_v17  ;;  %v879_v21 = vpop.f32.mrb[5].mxu0 }
 0x167   :  { %v963_v23 = vadd.f32 %v2556_v3, %v879_v21  ;;  %v881_v24 = vpop.f32.mrb[6].mxu0  ;;  %1274 = vmatprep.mubr.bf16.mxu1 %v1023_v18 }
 0x168   :  { %v964_v25 = vadd.f32 %v2552_v2, %v881_v24  ;;  %v883_v26 = vpop.f32.mrb[7].mxu0  ;;  %1275 = vmatmul.mubr.bf16.vlgmr.msra.gmra.mrb[0].mxu1 %v1022_v16  ;;  %v994_v29 = vmax.f32 %v962_v20, 0.0 }
 0x169   :  { %v965_v27 = vadd.f32 %v2556_v3, %v883_v26  ;;  %1806 = vmatpush3.bf16.msra.mxu1 %v2099_v19  ;;  %v995_v32 = vmax.f32 %v963_v23, 0.0 }
 0x16a   :  { %v996_v30 = vmax.f32 %v964_v25, 0.0  ;;  %1807 = vmatprep.subr.bf16.mxu1 %v2100_v22 }
 0x16b   :  { %v997_v33 = vmax.f32 %v965_v27, 0.0 }
 0x16c   :  { %v1024_v34 = vpack.c.bf16 %v996_v30, %v994_v29 }
 0x16d   :  { %v1025_v35 = vpack.c.bf16 %v997_v33, %v995_v32  ;;  %v887_v36 = vpop.f32.mrb[8].mxu0  ;;  %1808 = vmatpush3.bf16.msra.mxu1 %v2101_v28 }
 0x16e   :  { %v966_v38 = vadd.f32 %v2552_v2, %v887_v36  ;;  %v889_v39 = vpop.f32.mrb[9].mxu0  ;;  %1809 = vmatprep.subr.bf16.mxu1 %v2102_v31 }
 0x16f   :  { %v967_v41 = vadd.f32 %v2556_v3, %v889_v39  ;;  %v891_v42 = vpop.f32.mrb[10].mxu0  ;;  %1284 = vmatprep.mubr.bf16.mxu1 %v1025_v35 }
 0x170   :  { %v968_v43 = vadd.f32 %v2552_v2, %v891_v42  ;;  %v893_v44 = vpop.f32.mrb[11].mxu0  ;;  %1285 = vmatmul.mubr.bf16.gmra.mrb[4].mxu1 %v1024_v34  ;;  %v998_v47 = vmax.f32 %v966_v38, 0.0 }
 0x171   :  { %v969_v45 = vadd.f32 %v2556_v3, %v893_v44  ;;  %1810 = vmatpush3.bf16.msra.mxu1 %v2103_v37  ;;  %v999_v50 = vmax.f32 %v967_v41, 0.0 }
 0x172   :  { %v1000_v48 = vmax.f32 %v968_v43, 0.0  ;;  %1811 = vmatprep.subr.bf16.mxu1 %v2104_v40 }
 0x173   :  { %v1001_v51 = vmax.f32 %v969_v45, 0.0 }
 0x174   :  { %v1026_v52 = vpack.c.bf16 %v1000_v48, %v998_v47 }
 0x175   :  { %v1027_v53 = vpack.c.bf16 %v1001_v51, %v999_v50  ;;  %v897_v54 = vpop.f32.mrb[12].mxu0  ;;  %1812 = vmatpush3.bf16.msra.mxu1 %v2105_v46 }
 0x176   :  { %v970_v56 = vadd.f32 %v2552_v2, %v897_v54  ;;  %v899_v57 = vpop.f32.mrb[13].mxu0  ;;  %1813 = vmatprep.subr.bf16.mxu1 %v2106_v49 }
 0x177   :  { %v971_v58 = vadd.f32 %v2556_v3, %v899_v57  ;;  %v901_v59 = vpop.f32.mrb[14].mxu0  ;;  %1294 = vmatprep.mubr.bf16.mxu1 %v1027_v53 }
 0x178   :  { %v972_v60 = vadd.f32 %v2552_v2, %v901_v59  ;;  %v903_v63 = vpop.f32.mrb[15].mxu0  ;;  %1295 = vmatmul.mubr.bf16.gmra.mrb[8].mxu1 %v1026_v52  ;;  %v1002_v6 = vmax.f32 %v970_v56, 0.0 }
 0x179   :  { %v973_v4 = vadd.f32 %v2556_v3, %v903_v63  ;;  %1814 = vmatpush3.bf16.msra.mxu1 %v2107_v55  ;;  %v1003_v9 = vmax.f32 %v971_v58, 0.0 }
 0x17a   :  { %v1004_v7 = vmax.f32 %v972_v60, 0.0  ;;  %1815 = vmatprep.subr.bf16.mxu1 %v2108_v1 }
 0x17b   :  { %v1005_v10 = vmax.f32 %v973_v4, 0.0 }
 0x17c   :  { %v1028_v11 = vpack.c.bf16 %v1004_v7, %v1002_v6 }
 0x17d   :  { %v1029_v12 = vpack.c.bf16 %v1005_v10, %v1003_v9  ;;  %v907_v13 = vpop.f32.mrb[16].mxu0  ;;  %1816 = vmatpush3.bf16.msra.mxu1 %v2109_v5 }
 0x17e   :  { %v974_v15 = vadd.f32 %v2552_v2, %v907_v13  ;;  %v909_v16 = vpop.f32.mrb[17].mxu0  ;;  %1817 = vmatprep.subr.bf16.mxu1 %v2110_v8 }
 0x17f   :  { %v975_v17 = vadd.f32 %v2556_v3, %v909_v16  ;;  %v911_v18 = vpop.f32.mrb[18].mxu0  ;;  %1304 = vmatprep.mubr.bf16.mxu1 %v1029_v12 }
 0x180   :  { %v976_v19 = vadd.f32 %v2552_v2, %v911_v18  ;;  %v913_v20 = vpop.f32.mrb[19].mxu0  ;;  %1305 = vmatmul.mubr.bf16.gmra.mrb[12].mxu1 %v1028_v11  ;;  %v1006_v22 = vmax.f32 %v974_v15, 0.0  ;;  %v2112_v11 = vld [vmem:[%s2752_s7 + $0x78] sm:$0xff]  }
 0x181   :  { %v977_v21 = vadd.f32 %v2556_v3, %v913_v20  ;;  %1818 = vmatpush3.bf16.msra.mxu1 %v2111_v14  ;;  %v1007_v24 = vmax.f32 %v975_v17, 0.0 }
 0x182   :  { %v1008_v23 = vmax.f32 %v976_v19, 0.0  ;;  %1819 = vmatprep.subr.bf16.mxu1 %v2112_v11 }
 0x183   :  { %v1009_v25 = vmax.f32 %v977_v21, 0.0 }
 0x184   :  { %v1030_v26 = vpack.c.bf16 %v1008_v23, %v1006_v22 }
 0x185   :  { %v1031_v27 = vpack.c.bf16 %v1009_v25, %v1007_v24  ;;  %v917_v28 = vpop.f32.mrb[20].mxu0 }
 0x186   :  { %v978_v29 = vadd.f32 %v2552_v2, %v917_v28  ;;  %v919_v30 = vpop.f32.mrb[21].mxu0 }
 0x187   :  { %v979_v31 = vadd.f32 %v2556_v3, %v919_v30  ;;  %v921_v32 = vpop.f32.mrb[22].mxu0  ;;  %1314 = vmatprep.mubr.bf16.mxu1 %v1031_v27 }
 0x188   :  { %v980_v33 = vadd.f32 %v2552_v2, %v921_v32  ;;  %v923_v34 = vpop.f32.mrb[23].mxu0  ;;  %1315 = vmatmul.mubr.bf16.gmra.mrb[16].mxu1 %v1030_v26  ;;  %v1010_v36 = vmax.f32 %v978_v29, 0.0 }
 0x189   :  { %v981_v35 = vadd.f32 %v2556_v3, %v923_v34  ;;  %v1011_v38 = vmax.f32 %v979_v31, 0.0 }
 0x18a   :  { %v1012_v37 = vmax.f32 %v980_v33, 0.0 }
 0x18b   :  { %v1013_v39 = vmax.f32 %v981_v35, 0.0 }
 0x18c   :  { %v1032_v40 = vpack.c.bf16 %v1012_v37, %v1010_v36 }
 0x18d   :  { %v1033_v41 = vpack.c.bf16 %v1013_v39, %v1011_v38  ;;  %v927_v42 = vpop.f32.mrb[24].mxu0 }
 0x18e   :  { %v982_v43 = vadd.f32 %v2552_v2, %v927_v42  ;;  %v929_v44 = vpop.f32.mrb[25].mxu0 }
 0x18f   :  { %v983_v45 = vadd.f32 %v2556_v3, %v929_v44  ;;  %v931_v46 = vpop.f32.mrb[26].mxu0  ;;  %1324 = vmatprep.mubr.bf16.mxu1 %v1033_v41 }
 0x190   :  { %v984_v47 = vadd.f32 %v2552_v2, %v931_v46  ;;  %v933_v48 = vpop.f32.mrb[27].mxu0  ;;  %1325 = vmatmul.mubr.bf16.gmra.mrb[20].mxu1 %v1032_v40  ;;  %v1014_v50 = vmax.f32 %v982_v43, 0.0 }
 0x191   :  { %v985_v49 = vadd.f32 %v2556_v3, %v933_v48  ;;  %v1015_v52 = vmax.f32 %v983_v45, 0.0 }
 0x192   :  { %v1016_v51 = vmax.f32 %v984_v47, 0.0 }
 0x193   :  { %v1017_v53 = vmax.f32 %v985_v49, 0.0 }
 0x194   :  { %v1034_v54 = vpack.c.bf16 %v1016_v51, %v1014_v50 }
 0x195   :  { %v1035_v55 = vpack.c.bf16 %v1017_v53, %v1015_v52  ;;  %v937_v56 = vpop.f32.mrb[28].mxu0 }
 0x196   :  { %v986_v57 = vadd.f32 %v2552_v2, %v937_v56  ;;  %v939_v1 = vpop.f32.mrb[29].mxu0 }
 0x197   :  { %v987_v58 = vadd.f32 %v2556_v3, %v939_v1  ;;  %v941_v59 = vpop.f32.mrb[30].mxu0  ;;  %1334 = vmatprep.mubr.bf16.mxu1 %v1035_v55 }
 0x198   :  { %v988_v60 = vadd.f32 %v2552_v2, %v941_v59  ;;  %v943_v63 = vpop.f32.mrb[31].mxu0  ;;  %1335 = vmatmul.mubr.bf16.gmra.mrb[24].mxu1 %v1034_v54  ;;  %v1018_v5 = vmax.f32 %v986_v57, 0.0  ;;  %v2113_v2 = vld [vmem:[%s2752_s7 + $0x38] sm:$0xff]  }
 0x199   :  { %v989_v4 = vadd.f32 %v2556_v3, %v943_v63  ;;  %v1019_v7 = vmax.f32 %v987_v58, 0.0  ;;  %1820 = vmatpush3.bf16.msra.mxu1 %v2113_v2  ;;  %v1070_v3 = vld [vmem:[%s2754_s6] sm:$0x3] }
 0x19a   :  { %v1020_v6 = vmax.f32 %v988_v60, 0.0  ;;  %v2640_v12 = vrot.slane %v1070_v3, %v950_v62  ;;  %v2644_v13 = vrot.slane %v1070_v3, %v954_v0 }
 0x19b   :  { %v1021_v8 = vmax.f32 %v989_v4, 0.0 }
 0x19c   :  { %v1036_v9 = vpack.c.bf16 %v1020_v6, %v1018_v5 }
 0x19d   :  { %v1037_v10 = vpack.c.bf16 %v1021_v8, %v1019_v7 }
 0x19f   :  { %1344 = vmatprep.mubr.bf16.mxu1 %v1037_v10 }
 0x1a0   :  { %1345 = vmatmul.mubr.bf16.gmra.mrb[28].mxu1 %v1036_v9 }
 0x23b   :  { %v1276_v14 = vpop.f32.mrb[0].mxu1 }
 0x23c   :  { %v1277_v15 = vadd.f32 %v1276_v14, %v2640_v12  ;;  %v1278_v16 = vpop.f32.mrb[1].mxu1 }
 0x23d   :  { %v1279_v17 = vadd.f32 %v1278_v16, %v2644_v13  ;;  %v1280_v18 = vpop.f32.mrb[2].mxu1 }
 0x23e   :  { %v1281_v19 = vadd.f32 %v1280_v18, %v2640_v12  ;;  %v1282_v20 = vpop.f32.mrb[3].mxu1  ;;  %v1355_v22 = vmax.f32 %v1277_v15, 0.0 }
 0x23f   :  { %v1283_v21 = vadd.f32 %v1282_v20, %v2644_v13  ;;  %v1356_v62 = vmax.f32 %v1279_v17, 0.0 }
 0x240   :  { %v1357_v23 = vmax.f32 %v1281_v19, 0.0 }
 0x241   :  { %v1358_v24 = vmax.f32 %v1283_v21, 0.0 }
 0x242   :  { %v1387_v25 = vpack.c.bf16 %v1357_v23, %v1355_v22 }
 0x243   :  { %v1388_v61 = vpack.c.bf16 %v1358_v24, %v1356_v62  ;;  %v1286_v0 = vpop.f32.mrb[4].mxu1 }
 0x244   :  { %v1287_v26 = vadd.f32 %v1286_v0, %v2640_v12  ;;  %v1288_v27 = vpop.f32.mrb[5].mxu1 }
 0x245   :  { %v1289_v28 = vadd.f32 %v1288_v27, %v2644_v13  ;;  %v1290_v29 = vpop.f32.mrb[6].mxu1  ;;  %1570 = vmatprep.mubr.bf16.mxu1 %v1388_v61 }
 0x246   :  { %v1291_v30 = vadd.f32 %v1290_v29, %v2640_v12  ;;  %v1292_v31 = vpop.f32.mrb[7].mxu1  ;;  %1571 = vmatmul.mubr.bf16.vlgmr.msra.gmra.mrb[32].mxu1 %v1387_v25  ;;  %v1359_v33 = vmax.f32 %v1287_v26, 0.0 }
 0x247   :  { %v1293_v32 = vadd.f32 %v1292_v31, %v2644_v13  ;;  %v1360_v35 = vmax.f32 %v1289_v28, 0.0 }
 0x248   :  { %v1361_v34 = vmax.f32 %v1291_v30, 0.0 }
 0x249   :  { %v1362_v36 = vmax.f32 %v1293_v32, 0.0 }
 0x24a   :  { %v1389_v37 = vpack.c.bf16 %v1361_v34, %v1359_v33 }
 0x24b   :  { %v1390_v38 = vpack.c.bf16 %v1362_v36, %v1360_v35  ;;  %v1296_v39 = vpop.f32.mrb[8].mxu1 }
 0x24c   :  { %v1297_v40 = vadd.f32 %v1296_v39, %v2640_v12  ;;  %v1298_v41 = vpop.f32.mrb[9].mxu1 }
 0x24d   :  { %v1299_v42 = vadd.f32 %v1298_v41, %v2644_v13  ;;  %v1300_v43 = vpop.f32.mrb[10].mxu1  ;;  %1578 = vmatprep.mubr.bf16.mxu1 %v1390_v38 }
 0x24e   :  { %v1301_v44 = vadd.f32 %v1300_v43, %v2640_v12  ;;  %v1302_v45 = vpop.f32.mrb[11].mxu1  ;;  %1579 = vmatmul.mubr.bf16.gmra.mrb[36].mxu1 %v1389_v37  ;;  %v1363_v47 = vmax.f32 %v1297_v40, 0.0 }
 0x24f   :  { %v1303_v46 = vadd.f32 %v1302_v45, %v2644_v13  ;;  %v1364_v49 = vmax.f32 %v1299_v42, 0.0 }
 0x250   :  { %v1365_v48 = vmax.f32 %v1301_v44, 0.0 }
 0x251   :  { %v1366_v50 = vmax.f32 %v1303_v46, 0.0 }
 0x252   :  { %v1391_v51 = vpack.c.bf16 %v1365_v48, %v1363_v47 }
 0x253   :  { %v1392_v52 = vpack.c.bf16 %v1366_v50, %v1364_v49  ;;  %v1306_v53 = vpop.f32.mrb[12].mxu1 }
 0x254   :  { %v1307_v54 = vadd.f32 %v1306_v53, %v2640_v12  ;;  %v1308_v55 = vpop.f32.mrb[13].mxu1 }
 0x255   :  { %v1309_v56 = vadd.f32 %v1308_v55, %v2644_v13  ;;  %v1310_v57 = vpop.f32.mrb[14].mxu1  ;;  %1586 = vmatprep.mubr.bf16.mxu1 %v1392_v52 }
 0x256   :  { %v1311_v1 = vadd.f32 %v1310_v57, %v2640_v12  ;;  %v1312_v58 = vpop.f32.mrb[15].mxu1  ;;  %1587 = vmatmul.mubr.bf16.gmra.mrb[40].mxu1 %v1391_v51  ;;  %v1367_v60 = vmax.f32 %v1307_v54, 0.0 }
 0x257   :  { %v1313_v59 = vadd.f32 %v1312_v58, %v2644_v13  ;;  %v1368_v4 = vmax.f32 %v1309_v56, 0.0 }
 0x258   :  { %v1369_v63 = vmax.f32 %v1311_v1, 0.0 }
 0x259   :  { %v1370_v5 = vmax.f32 %v1313_v59, 0.0 }
 0x25a   :  { %v1393_v6 = vpack.c.bf16 %v1369_v63, %v1367_v60  ;;  %v2681_v63 = vld [vmem:[%s2755_s8] ss:$0 sm:$0xff] }
 0x25b   :  { %v1394_v7 = vpack.c.bf16 %v1370_v5, %v1368_v4  ;;  %v1316_v8 = vpop.f32.mrb[16].mxu1 }
 0x25c   :  { %v1317_v9 = vadd.f32 %v1316_v8, %v2640_v12  ;;  %v1318_v10 = vpop.f32.mrb[17].mxu1 }
 0x25d   :  { %v1319_v11 = vadd.f32 %v1318_v10, %v2644_v13  ;;  %v1320_v2 = vpop.f32.mrb[18].mxu1  ;;  %1594 = vmatprep.mubr.bf16.mxu1 %v1394_v7 }
 0x25e   :  { %v1321_v3 = vadd.f32 %v1320_v2, %v2640_v12  ;;  %v1322_v14 = vpop.f32.mrb[19].mxu1  ;;  %1595 = vmatmul.mubr.bf16.gmra.mrb[44].mxu1 %v1393_v6  ;;  %v1371_v16 = vmax.f32 %v1317_v9, 0.0 }
 0x25f   :  { %v1323_v15 = vadd.f32 %v1322_v14, %v2644_v13  ;;  %v1372_v18 = vmax.f32 %v1319_v11, 0.0 }
 0x260   :  { %v1373_v17 = vmax.f32 %v1321_v3, 0.0 }
 0x261   :  { %v1374_v19 = vmax.f32 %v1323_v15, 0.0 }
 0x262   :  { %v1395_v20 = vpack.c.bf16 %v1373_v17, %v1371_v16 }
 0x263   :  { %v1396_v21 = vpack.c.bf16 %v1374_v19, %v1372_v18  ;;  %v1326_v22 = vpop.f32.mrb[20].mxu1 }
 0x264   :  { %v1327_v23 = vadd.f32 %v1326_v22, %v2640_v12  ;;  %v1328_v62 = vpop.f32.mrb[21].mxu1 }
 0x265   :  { %v1329_v24 = vadd.f32 %v1328_v62, %v2644_v13  ;;  %v1330_v25 = vpop.f32.mrb[22].mxu1  ;;  %1602 = vmatprep.mubr.bf16.mxu1 %v1396_v21 }
 0x266   :  { %v1331_v61 = vadd.f32 %v1330_v25, %v2640_v12  ;;  %v1332_v0 = vpop.f32.mrb[23].mxu1  ;;  %1603 = vmatmul.mubr.bf16.gmra.mrb[48].mxu1 %v1395_v20  ;;  %v1375_v27 = vmax.f32 %v1327_v23, 0.0 }
 0x267   :  { %v1333_v26 = vadd.f32 %v1332_v0, %v2644_v13  ;;  %v1376_v29 = vmax.f32 %v1329_v24, 0.0 }
 0x268   :  { %v1377_v28 = vmax.f32 %v1331_v61, 0.0 }
 0x269   :  { %v1378_v30 = vmax.f32 %v1333_v26, 0.0 }
 0x26a   :  { %v1397_v31 = vpack.c.bf16 %v1377_v28, %v1375_v27 }
 0x26b   :  { %v1398_v32 = vpack.c.bf16 %v1378_v30, %v1376_v29  ;;  %v1336_v33 = vpop.f32.mrb[24].mxu1 }
 0x26c   :  { %v1337_v34 = vadd.f32 %v1336_v33, %v2640_v12  ;;  %v1338_v35 = vpop.f32.mrb[25].mxu1 }
 0x26d   :  { %v1339_v36 = vadd.f32 %v1338_v35, %v2644_v13  ;;  %v1340_v37 = vpop.f32.mrb[26].mxu1  ;;  %1610 = vmatprep.mubr.bf16.mxu1 %v1398_v32 }
 0x26e   :  { %v1341_v38 = vadd.f32 %v1340_v37, %v2640_v12  ;;  %v1342_v39 = vpop.f32.mrb[27].mxu1  ;;  %1611 = vmatmul.mubr.bf16.gmra.mrb[52].mxu1 %v1397_v31  ;;  %v1379_v41 = vmax.f32 %v1337_v34, 0.0 }
 0x26f   :  { %v1343_v40 = vadd.f32 %v1342_v39, %v2644_v13  ;;  %v1380_v43 = vmax.f32 %v1339_v36, 0.0 }
 0x270   :  { %v1381_v42 = vmax.f32 %v1341_v38, 0.0 }
 0x271   :  { %v1382_v44 = vmax.f32 %v1343_v40, 0.0 }
 0x272   :  { %v1399_v45 = vpack.c.bf16 %v1381_v42, %v1379_v41 }
 0x273   :  { %v1400_v46 = vpack.c.bf16 %v1382_v44, %v1380_v43  ;;  %v1346_v47 = vpop.f32.mrb[28].mxu1 }
 0x274   :  { %v1347_v48 = vadd.f32 %v1346_v47, %v2640_v12  ;;  %v1348_v49 = vpop.f32.mrb[29].mxu1 }
 0x275   :  { %v1349_v50 = vadd.f32 %v1348_v49, %v2644_v13  ;;  %v1350_v51 = vpop.f32.mrb[30].mxu1  ;;  %1618 = vmatprep.mubr.bf16.mxu1 %v1400_v46 }
 0x276   :  { %v1351_v52 = vadd.f32 %v1350_v51, %v2640_v12  ;;  %v1352_v53 = vpop.f32.mrb[31].mxu1  ;;  %1619 = vmatmul.mubr.bf16.gmra.mrb[56].mxu1 %v1399_v45  ;;  %v1383_v55 = vmax.f32 %v1347_v48, 0.0 }
 0x277   :  { %v1353_v54 = vadd.f32 %v1352_v53, %v2644_v13  ;;  %v1384_v57 = vmax.f32 %v1349_v50, 0.0 }
 0x278   :  { %v1385_v56 = vmax.f32 %v1351_v52, 0.0 }
 0x279   :  { %v1386_v1 = vmax.f32 %v1353_v54, 0.0 }
 0x27a   :  { %v1401_v58 = vpack.c.bf16 %v1385_v56, %v1383_v55 }
 0x27b   :  { %v1402_v59 = vpack.c.bf16 %v1386_v1, %v1384_v57 }
 0x27d   :  { %1626 = vmatprep.mubr.bf16.mxu1 %v1402_v59 }
 0x27e   :  { %1627 = vmatmul.mubr.bf16.gmra.mrb[60].mxu1 %v1401_v58 }
 0x319   :  { %v1821_v60 = vpop.f32.mrb[32].mxu1 }
 0x31a   :  { %v1822_v4 = vpop.f32.mrb[33].mxu1 }
 0x31b   :  { %v1823_v12 = vadd.f32 %v1822_v4, %v1821_v60  ;;  %v1824_v5 = vpop.f32.mrb[34].mxu1 }
 0x31c   :  { %v1825_v6 = vpop.f32.mrb[35].mxu1 }
 0x31d   :  { %v1573_v13 = vadd.f32 %v1823_v12, %v2681_v63  ;;  %v1826_v7 = vadd.f32 %v1825_v6, %v1824_v5 }
 0x31f   :  { %1635 = vst [vmem:[%s2756_s9] sm:$0xff] %v1573_v13  ;;  %v1576_v8 = vadd.f32 %v1826_v7, %v2681_v63 }
 0x321   :  { %1636 = vst [vmem:[%s2756_s9 + $0x8] sm:$0xff] %v1576_v8  ;;  %v1827_v9 = vpop.f32.mrb[36].mxu1 }
 0x322   :  { %v1828_v10 = vpop.f32.mrb[37].mxu1 }
 0x323   :  { %v1829_v11 = vadd.f32 %v1828_v10, %v1827_v9  ;;  %v1830_v2 = vpop.f32.mrb[38].mxu1 }
 0x324   :  { %v1831_v3 = vpop.f32.mrb[39].mxu1 }
 0x325   :  { %v1581_v14 = vadd.f32 %v1829_v11, %v2681_v63  ;;  %v1832_v15 = vadd.f32 %v1831_v3, %v1830_v2 }
 0x327   :  { %1637 = vst [vmem:[%s2756_s9 + $0x10] sm:$0xff] %v1581_v14  ;;  %v1584_v16 = vadd.f32 %v1832_v15, %v2681_v63 }
 0x329   :  { %1638 = vst [vmem:[%s2756_s9 + $0x18] sm:$0xff] %v1584_v16  ;;  %v1833_v17 = vpop.f32.mrb[40].mxu1 }
 0x32a   :  { %v1834_v18 = vpop.f32.mrb[41].mxu1 }
 0x32b   :  { %v1835_v19 = vadd.f32 %v1834_v18, %v1833_v17  ;;  %v1836_v20 = vpop.f32.mrb[42].mxu1 }
 0x32c   :  { %v1837_v21 = vpop.f32.mrb[43].mxu1 }
 0x32d   :  { %v1589_v22 = vadd.f32 %v1835_v19, %v2681_v63  ;;  %v1838_v23 = vadd.f32 %v1837_v21, %v1836_v20 }
 0x32f   :  { %1639 = vst [vmem:[%s2756_s9 + $0x20] sm:$0xff] %v1589_v22  ;;  %v1592_v62 = vadd.f32 %v1838_v23, %v2681_v63 }
 0x331   :  { %1640 = vst [vmem:[%s2756_s9 + $0x28] sm:$0xff] %v1592_v62  ;;  %v1839_v24 = vpop.f32.mrb[44].mxu1 }
 0x332   :  { %v1840_v25 = vpop.f32.mrb[45].mxu1 }
 0x333   :  { %v1841_v61 = vadd.f32 %v1840_v25, %v1839_v24  ;;  %v1842_v0 = vpop.f32.mrb[46].mxu1 }
 0x334   :  { %v1843_v26 = vpop.f32.mrb[47].mxu1 }
 0x335   :  { %v1597_v27 = vadd.f32 %v1841_v61, %v2681_v63  ;;  %v1844_v28 = vadd.f32 %v1843_v26, %v1842_v0 }
 0x337   :  { %1641 = vst [vmem:[%s2756_s9 + $0x30] sm:$0xff] %v1597_v27  ;;  %v1600_v29 = vadd.f32 %v1844_v28, %v2681_v63 }
 0x339   :  { %1642 = vst [vmem:[%s2756_s9 + $0x38] sm:$0xff] %v1600_v29  ;;  %v1845_v30 = vpop.f32.mrb[48].mxu1 }
 0x33a   :  { %v1846_v31 = vpop.f32.mrb[49].mxu1 }
 0x33b   :  { %v1847_v32 = vadd.f32 %v1846_v31, %v1845_v30  ;;  %v1848_v33 = vpop.f32.mrb[50].mxu1 }
 0x33c   :  { %v1849_v34 = vpop.f32.mrb[51].mxu1 }
 0x33d   :  { %v1605_v35 = vadd.f32 %v1847_v32, %v2681_v63  ;;  %v1850_v36 = vadd.f32 %v1849_v34, %v1848_v33 }
 0x33f   :  { %1643 = vst [vmem:[%s2756_s9 + $0x40] sm:$0xff] %v1605_v35  ;;  %v1608_v37 = vadd.f32 %v1850_v36, %v2681_v63 }
 0x341   :  { %1644 = vst [vmem:[%s2756_s9 + $0x48] sm:$0xff] %v1608_v37  ;;  %v1851_v38 = vpop.f32.mrb[52].mxu1 }
 0x342   :  { %v1852_v39 = vpop.f32.mrb[53].mxu1 }
 0x343   :  { %v1853_v40 = vadd.f32 %v1852_v39, %v1851_v38  ;;  %v1854_v41 = vpop.f32.mrb[54].mxu1 }
 0x344   :  { %v1855_v42 = vpop.f32.mrb[55].mxu1 }
 0x345   :  { %v1613_v43 = vadd.f32 %v1853_v40, %v2681_v63  ;;  %v1856_v44 = vadd.f32 %v1855_v42, %v1854_v41 }
 0x347   :  { %1645 = vst [vmem:[%s2756_s9 + $0x50] sm:$0xff] %v1613_v43  ;;  %v1616_v45 = vadd.f32 %v1856_v44, %v2681_v63 }
 0x349   :  { %1646 = vst [vmem:[%s2756_s9 + $0x58] sm:$0xff] %v1616_v45  ;;  %v1857_v46 = vpop.f32.mrb[56].mxu1 }
 0x34a   :  { %v1858_v47 = vpop.f32.mrb[57].mxu1 }
 0x34b   :  { %v1859_v48 = vadd.f32 %v1858_v47, %v1857_v46  ;;  %v1860_v49 = vpop.f32.mrb[58].mxu1 }
 0x34c   :  { %v1861_v50 = vpop.f32.mrb[59].mxu1 }
 0x34d   :  { %v1621_v51 = vadd.f32 %v1859_v48, %v2681_v63  ;;  %v1862_v52 = vadd.f32 %v1861_v50, %v1860_v49 }
 0x34f   :  { %1647 = vst [vmem:[%s2756_s9 + $0x60] sm:$0xff] %v1621_v51  ;;  %v1624_v53 = vadd.f32 %v1862_v52, %v2681_v63 }
 0x351   :  { %1648 = vst [vmem:[%s2756_s9 + $0x68] sm:$0xff] %v1624_v53  ;;  %v1863_v54 = vpop.f32.mrb[60].mxu1 }
 0x352   :  { %v1864_v55 = vpop.f32.mrb[61].mxu1 }
 0x353   :  { %v1865_v56 = vadd.f32 %v1864_v55, %v1863_v54  ;;  %v1866_v57 = vpop.f32.mrb[62].mxu1 }
 0x354   :  { %v1867_v1 = vpop.f32.mrb[63].mxu1 }
 0x355   :  { %v1629_v58 = vadd.f32 %v1865_v56, %v2681_v63  ;;  %v1868_v59 = vadd.f32 %v1867_v1, %v1866_v57 }
 0x357   :  { %1649 = vst [vmem:[%s2756_s9 + $0x70] sm:$0xff] %v1629_v58  ;;  %v1632_v60 = vadd.f32 %v1868_v59, %v2681_v63 }
 0x359   :  { %1650 = vst [vmem:[%s2756_s9 + $0x78] sm:$0xff] %v1632_v60 }

</bundles_post_ra>
